<compile_context>
chip_gen: v7x
topology: tpu7x:2x2x1
jax: 0.10.0
libtpu: 0.0.40
codegen_flags: <defaults>
</compile_context>

<pallas_src>
import math

import jax
import jax.numpy as jnp
from jax.experimental import pallas as pl
from jax.experimental.pallas import tpu as pltpu

LANE = 128     # TPU lane width
TB = 8         # batch rows handled per grid step (f32 sublane multiple)


def _round_up(n, m):
    return ((n + m - 1) // m) * m


def _pad2(a, shape):
    return jnp.pad(a, [(0, t - s) for s, t in zip(a.shape, shape)])


# ----------------------------- Pallas kernel --------------------------------
def diffusion_prior_kernel(qpack_ref, cond_ref, enc_ref, w1_ref, w2_ref,
                           bias_ref, sqerr_ref):
    tb = qpack_ref.shape[1]            # batch rows in this tile
    seq = enc_ref.shape[0] // tb       # text sequence length
    hp = w1_ref.shape[1]               # padded hidden
    dp = w2_ref.shape[1]               # padded embed dim

    x = qpack_ref[0]                   # (TB, Dp) scaled image embed (target)
    noise = qpack_ref[1]
    sa = qpack_ref[2]                  # sqrt(alphas_cumprod[t]) broadcast on lanes
    s1ma = qpack_ref[3]                # sqrt(1 - alphas_cumprod[t])

    # q_sample (NoiseScheduler) — f32 on the VPU
    x_noisy = sa * x + s1ma * noise

    # mean-pool the text encodings over the sequence via an MXU matmul
    # (pooling matrix built from iota: row b averages enc rows [b*S, (b+1)*S))
    row = jax.lax.broadcasted_iota(jnp.int32, (tb, tb * seq), 0)
    col = jax.lax.broadcasted_iota(jnp.int32, (tb, tb * seq), 1)
    seg = (col >= row * seq) & (col < (row + 1) * seq)
    pool = jnp.where(seg, jnp.float32(1.0 / seq), jnp.float32(0.0))
    enc_pooled = jnp.dot(pool, enc_ref[...], preferred_element_type=jnp.float32)

    # prior-network surrogate: single fused K = 4*Dp matmul (bf16 in, f32 acc)
    feat = jnp.concatenate([x_noisy, cond_ref[...], enc_pooled], axis=-1)
    b1 = bias_ref[0:1, :hp]
    b2 = bias_ref[1:2, :dp]
    h = jnp.dot(feat.astype(jnp.bfloat16), w1_ref[...],
                preferred_element_type=jnp.float32) + b1
    h = jnp.maximum(h, 0.0)
    pred = jnp.dot(h.astype(jnp.bfloat16), w2_ref[...],
                   preferred_element_type=jnp.float32) + b2

    # predict_x_start=True, loss_type='l2': squared error vs scaled image embed.
    # Lane-dense tile out; tiny final mean finished in the wrapper.
    diff = pred - x
    sqerr_ref[...] = diff * diff


def pallas_diffusion_prior_loss(x, noise, sa, s1ma, temb, txt, enc, params):
    B, D = x.shape
    S = enc.shape[1]
    H = params["w1x"].shape[1]

    Bp = _round_up(B, TB)
    Dp = _round_up(D, LANE)
    Hp = _round_up(H, LANE)
    BW = max(Hp, Dp)
    ntiles = Bp // TB
    f32 = jnp.float32

    # pack q_sample operands: x, noise, and per-row scalars pre-broadcast to lanes
    x_p = _pad2(x.astype(f32), (Bp, Dp))
    noise_p = _pad2(noise.astype(f32), (Bp, Dp))
    sa_p = _pad2(jnp.broadcast_to(sa.astype(f32)[:, None], (B, D)), (Bp, Dp))
    s1ma_p = _pad2(jnp.broadcast_to(s1ma.astype(f32)[:, None], (B, D)), (Bp, Dp))
    qpack = jnp.stack([x_p, noise_p, sa_p, s1ma_p], axis=0)            # (4, Bp, Dp)

    # pack conditioning: [time embedding | text embedding]
    cond = jnp.concatenate([_pad2(temb.astype(f32), (Bp, Dp)),
                            _pad2(txt.astype(f32), (Bp, Dp))], axis=-1)  # (Bp, 2Dp)

    # text encodings flattened so pooling is a 2-D MXU matmul inside the kernel
    enc_p = jnp.pad(enc.astype(f32), ((0, Bp - B), (0, 0), (0, Dp - D)))
    enc_flat = enc_p.reshape(Bp * S, Dp)                               # (Bp*S, Dp)

    # fused W1 (rows ordered to match feat = [x_noisy | temb | txt | pooled]); bf16
    w1 = jnp.concatenate([_pad2(params["w1x"], (Dp, Hp)),
                          _pad2(params["w1t"], (Dp, Hp)),
                          _pad2(params["w1c"], (Dp, Hp)),
                          _pad2(params["w1e"], (Dp, Hp))],
                         axis=0).astype(jnp.bfloat16)                  # (4Dp, Hp)
    w2 = _pad2(params["w2"], (Hp, Dp)).astype(jnp.bfloat16)            # (Hp, Dp)

    # biases packed into one small lane-dense buffer (applied once per tile)
    bias = jnp.zeros((2, BW), f32)
    bias = bias.at[0, :H].set(params["b1"][0])
    bias = bias.at[1, :D].set(params["b2"][0])

    sqerr = pl.pallas_call(
        diffusion_prior_kernel,
        out_shape=jax.ShapeDtypeStruct((Bp, Dp), jnp.float32),
        grid=(ntiles,),
        in_specs=[
            pl.BlockSpec((4, TB, Dp), lambda i: (0, i, 0)),    # qpack (streams)
            pl.BlockSpec((TB, 2 * Dp), lambda i: (i, 0)),      # cond  (streams)
            pl.BlockSpec((TB * S, Dp), lambda i: (i, 0)),      # enc   (streams)
            pl.BlockSpec((4 * Dp, Hp), lambda i: (0, 0)),      # fused W1 (resident)
            pl.BlockSpec((Hp, Dp), lambda i: (0, 0)),          # W2      (resident)
            pl.BlockSpec((2, BW), lambda i: (0, 0)),           # packed biases
        ],
        out_specs=pl.BlockSpec((TB, Dp), lambda i: (i, 0)),
        compiler_params=pltpu.CompilerParams(
            dimension_semantics=("parallel",),          # 2 TCs on v7x; no-op elsewhere
            vmem_limit_bytes=32 * 1024 * 1024),         # safe on v7x's 64 MiB VMEM
    )(qpack, cond, enc_flat, w1, w2, bias)

    # finish mean over the valid (unpadded) region
    return jnp.sum(sqerr[:B, :D]) / (B * D)


# ------------------------- NoiseScheduler (glue) -----------------------------
def cosine_beta_schedule(timesteps, s=0.008):
    steps = timesteps + 1
    x = jnp.linspace(0.0, float(timesteps), steps)
    alphas_cumprod = jnp.cos(((x / timesteps) + s) / (1 + s) * math.pi * 0.5) ** 2
    alphas_cumprod = alphas_cumprod / alphas_cumprod[0]
    betas = 1.0 - (alphas_cumprod[1:] / alphas_cumprod[:-1])
    return jnp.clip(betas, 0.0, 0.999)


def make_noise_scheduler(timesteps):
    betas = cosine_beta_schedule(timesteps)
    alphas = 1.0 - betas
    alphas_cumprod = jnp.cumprod(alphas)
    return {
        "sqrt_alphas_cumprod": jnp.sqrt(alphas_cumprod),
        "sqrt_one_minus_alphas_cumprod": jnp.sqrt(1.0 - alphas_cumprod),
        "num_timesteps": timesteps,
    }


def timestep_embedding(t, dim):
    half = dim // 2
    freqs = jnp.exp(-math.log(10000.0) * jnp.arange(half, dtype=jnp.float32) / half)
    args = t.astype(jnp.float32)[:, None] * freqs[None, :]
    return jnp.concatenate([jnp.sin(args), jnp.cos(args)], axis=-1)


# --------------------------- forward (wrapper) -------------------------------
def diffusion_prior_forward(params, sched, image_embed, text_embed, text_encodings, key):
    B, D = image_embed.shape
    image_embed_scale = math.sqrt(D)

    k_t, k_n = jax.random.split(key)
    times = jax.random.randint(k_t, (B,), 0, sched["num_timesteps"])       # sample_random_times
    noise = jax.random.normal(k_n, image_embed.shape, dtype=jnp.float32)   # default noise

    x = image_embed * image_embed_scale                                    # image_embed *= scale
    sa = sched["sqrt_alphas_cumprod"][times].astype(jnp.float32)
    s1ma = sched["sqrt_one_minus_alphas_cumprod"][times].astype(jnp.float32)
    temb = timestep_embedding(times, D)

    loss = pallas_diffusion_prior_loss(x, noise, sa, s1ma, temb,
                                       text_embed, text_encodings, params)
    return loss, (x, noise, sa, s1ma, temb)


def reference_loss(x, noise, sa, s1ma, temb, txt, enc, params):
    # mirrors the kernel math (fused dot, bf16 matmul operands, f32 accumulation)
    x_noisy = sa[:, None] * x + s1ma[:, None] * noise
    enc_pooled = jnp.mean(enc, axis=1)
    feat = jnp.concatenate([x_noisy, temb, txt, enc_pooled], axis=-1)
    w1 = jnp.concatenate([params["w1x"], params["w1t"],
                          params["w1c"], params["w1e"]], axis=0)
    h = jnp.dot(feat.astype(jnp.bfloat16), w1.astype(jnp.bfloat16),
                preferred_element_type=jnp.float32) + params["b1"]
    h = jnp.maximum(h, 0.0)
    pred = jnp.dot(h.astype(jnp.bfloat16), params["w2"].astype(jnp.bfloat16),
                   preferred_element_type=jnp.float32) + params["b2"]
    return jnp.mean((pred - x) ** 2)


# --------------------------------- main --------------------------------------
if __name__ == "__main__":
    B, D, S, H = 4, 32, 8, 64          # batch, image_embed_dim, text seq len, net hidden
    TIMESTEPS = 1000

    root = jax.random.PRNGKey(0)
    k_img, k_txt, k_enc, k_p1, k_p2, k_p3, k_p4, k_p5, k_fwd = jax.random.split(root, 9)

    # deterministic "inputs" (would come from CLIP in the real module)
    image_embed = jax.random.normal(k_img, (B, D), dtype=jnp.float32)
    text_embed = jax.random.normal(k_txt, (B, D), dtype=jnp.float32)
    text_encodings = jax.random.normal(k_enc, (B, S, D), dtype=jnp.float32)

    # deterministic net parameters (MLP surrogate for DiffusionPriorNetwork)
    params = {
        "w1x": 0.05 * jax.random.normal(k_p1, (D, H), dtype=jnp.float32),
        "w1t": 0.05 * jax.random.normal(k_p2, (D, H), dtype=jnp.float32),
        "w1c": 0.05 * jax.random.normal(k_p3, (D, H), dtype=jnp.float32),
        "w1e": 0.05 * jax.random.normal(k_p4, (D, H), dtype=jnp.float32),
        "b1":  jnp.zeros((1, H), dtype=jnp.float32),
        "w2":  0.05 * jax.random.normal(k_p5, (H, D), dtype=jnp.float32),
        "b2":  jnp.zeros((1, D), dtype=jnp.float32),
    }

    sched = make_noise_scheduler(TIMESTEPS)

    loss, (x, noise, sa, s1ma, temb) = diffusion_prior_forward(
        params, sched, image_embed, text_embed, text_encodings, k_fwd)
    loss = jax.block_until_ready(loss)

    ref = reference_loss(x, noise, sa, s1ma, temb, text_embed, text_encodings, params)
    assert jnp.allclose(loss, ref, rtol=1e-3, atol=1e-3), (loss, ref)

    print("KERNEL_OK")
</pallas_src>

<mosaic_0001>
module attributes {stable_mosaic.version = 11 : i64} {
  func.func @diffusion_prior_kernel(%arg0: i32, %arg1: memref<4x8x128xf32, #tpu.memory_space<vmem>>, %arg2: memref<8x256xf32, #tpu.memory_space<vmem>>, %arg3: memref<64x128xf32, #tpu.memory_space<vmem>>, %arg4: memref<512x128xbf16, #tpu.memory_space<vmem>>, %arg5: memref<128x128xbf16, #tpu.memory_space<vmem>>, %arg6: memref<2x128xf32, #tpu.memory_space<vmem>>, %arg7: memref<8x128xf32, #tpu.memory_space<vmem>>) attributes {dimension_semantics = [#tpu.dimension_semantics<parallel>], iteration_bounds = array<i64: 1>, scalar_prefetch = 0 : i64, scratch_operands = 0 : i64, tpu.core_type = #tpu.core_type<tc>, window_params = [{transform_indices = @transform_0, window_bounds = array<i64: 4, 8, 128>}, {transform_indices = @transform_1, window_bounds = array<i64: 8, 256>}, {transform_indices = @transform_2, window_bounds = array<i64: 64, 128>}, {pipeline_mode = #tpu.pipeline_mode<synchronous>, transform_indices = @transform_3, window_bounds = array<i64: 512, 128>}, {pipeline_mode = #tpu.pipeline_mode<synchronous>, transform_indices = @transform_4, window_bounds = array<i64: 128, 128>}, {pipeline_mode = #tpu.pipeline_mode<synchronous>, transform_indices = @transform_5, window_bounds = array<i64: 2, 128>}, {transform_indices = @transform_6, window_bounds = array<i64: 8, 128>}]} {
    %c0 = arith.constant 0 : index
    %c0_0 = arith.constant 0 : index
    %c0_1 = arith.constant 0 : index
    %0 = vector.load %arg1[%c0, %c0_0, %c0_1] : memref<4x8x128xf32, #tpu.memory_space<vmem>>, vector<1x8x128xf32>
    %1 = vector.shape_cast %0 : vector<1x8x128xf32> to vector<8x128xf32>
    %c1 = arith.constant 1 : index
    %c0_2 = arith.constant 0 : index
    %c0_3 = arith.constant 0 : index
    %2 = vector.load %arg1[%c1, %c0_2, %c0_3] : memref<4x8x128xf32, #tpu.memory_space<vmem>>, vector<1x8x128xf32>
    %3 = vector.shape_cast %2 : vector<1x8x128xf32> to vector<8x128xf32>
    %c2 = arith.constant 2 : index
    %c0_4 = arith.constant 0 : index
    %c0_5 = arith.constant 0 : index
    %4 = vector.load %arg1[%c2, %c0_4, %c0_5] : memref<4x8x128xf32, #tpu.memory_space<vmem>>, vector<1x8x128xf32>
    %5 = vector.shape_cast %4 : vector<1x8x128xf32> to vector<8x128xf32>
    %c3 = arith.constant 3 : index
    %c0_6 = arith.constant 0 : index
    %c0_7 = arith.constant 0 : index
    %6 = vector.load %arg1[%c3, %c0_6, %c0_7] : memref<4x8x128xf32, #tpu.memory_space<vmem>>, vector<1x8x128xf32>
    %7 = vector.shape_cast %6 : vector<1x8x128xf32> to vector<8x128xf32>
    %8 = arith.mulf %5, %1 : vector<8x128xf32>
    %9 = arith.mulf %7, %3 : vector<8x128xf32>
    %10 = arith.addf %8, %9 : vector<8x128xf32>
    %11 = tpu.iota {dimensions = array<i32: 0>} : vector<8x64xi32>
    %12 = tpu.iota {dimensions = array<i32: 1>} : vector<8x64xi32>
    %c8_i32 = arith.constant 8 : i32
    %13 = vector.broadcast %c8_i32 : i32 to vector<8x64xi32>
    %14 = arith.muli %11, %13 : vector<8x64xi32>
    %15 = arith.cmpi sge, %12, %14 : vector<8x64xi32>
    %c1_i32 = arith.constant 1 : i32
    %16 = vector.broadcast %c1_i32 : i32 to vector<8x64xi32>
    %17 = arith.addi %11, %16 : vector<8x64xi32>
    %c8_i32_8 = arith.constant 8 : i32
    %18 = vector.broadcast %c8_i32_8 : i32 to vector<8x64xi32>
    %19 = arith.muli %17, %18 : vector<8x64xi32>
    %20 = arith.cmpi slt, %12, %19 : vector<8x64xi32>
    %21 = arith.andi %15, %20 : vector<8x64xi1>
    %cst = arith.constant 1.250000e-01 : f32
    %cst_9 = arith.constant 0.000000e+00 : f32
    %22 = vector.broadcast %cst : f32 to vector<8x64xf32>
    %23 = vector.broadcast %cst_9 : f32 to vector<8x64xf32>
    %24 = arith.select %21, %22, %23 : vector<8x64xi1>, vector<8x64xf32>
    %c0_10 = arith.constant 0 : index
    %c0_11 = arith.constant 0 : index
    %25 = vector.load %arg3[%c0_10, %c0_11] : memref<64x128xf32, #tpu.memory_space<vmem>>, vector<64x128xf32>
    %cst_12 = arith.constant dense<0.000000e+00> : vector<8x128xf32>
    %26 = tpu.matmul %24, %25, %cst_12 {dimension_numbers = #tpu.dot_dimension_numbers<[1], [0], [0], [1], [0, 0, 1, 1], [], []>} : vector<8x64xf32>, vector<64x128xf32>, vector<8x128xf32> -> vector<8x128xf32>
    %c0_13 = arith.constant 0 : index
    %c0_14 = arith.constant 0 : index
    %27 = vector.load %arg2[%c0_13, %c0_14] : memref<8x256xf32, #tpu.memory_space<vmem>>, vector<8x256xf32>
    %28 = tpu.concatenate %10, %27, %26 in 1 : vector<8x128xf32>, vector<8x256xf32>, vector<8x128xf32> -> vector<8x512xf32>
    %c0_15 = arith.constant 0 : index
    %c0_16 = arith.constant 0 : index
    %29 = vector.load %arg6[%c0_15, %c0_16] : memref<2x128xf32, #tpu.memory_space<vmem>>, vector<1x128xf32>
    %c1_17 = arith.constant 1 : index
    %c0_18 = arith.constant 0 : index
    %30 = vector.load %arg6[%c1_17, %c0_18] : memref<2x128xf32, #tpu.memory_space<vmem>>, vector<1x128xf32>
    %31 = arith.truncf %28 : vector<8x512xf32> to vector<8x512xbf16>
    %c0_19 = arith.constant 0 : index
    %c0_20 = arith.constant 0 : index
    %32 = vector.load %arg4[%c0_19, %c0_20] : memref<512x128xbf16, #tpu.memory_space<vmem>>, vector<512x128xbf16>
    %cst_21 = arith.constant dense<0.000000e+00> : vector<8x128xf32>
    %33 = tpu.matmul %31, %32, %cst_21 {dimension_numbers = #tpu.dot_dimension_numbers<[1], [0], [0], [1], [0, 0, 1, 1], [], []>} : vector<8x512xbf16>, vector<512x128xbf16>, vector<8x128xf32> -> vector<8x128xf32>
    %34 = vector.broadcast %29 : vector<1x128xf32> to vector<8x128xf32>
    %35 = arith.addf %33, %34 : vector<8x128xf32>
    %cst_22 = arith.constant 0.000000e+00 : f32
    %36 = vector.broadcast %cst_22 : f32 to vector<8x128xf32>
    %37 = arith.maximumf %35, %36 : vector<8x128xf32>
    %38 = arith.truncf %37 : vector<8x128xf32> to vector<8x128xbf16>
    %c0_23 = arith.constant 0 : index
    %c0_24 = arith.constant 0 : index
    %39 = vector.load %arg5[%c0_23, %c0_24] : memref<128x128xbf16, #tpu.memory_space<vmem>>, vector<128x128xbf16>
    %cst_25 = arith.constant dense<0.000000e+00> : vector<8x128xf32>
    %40 = tpu.matmul %38, %39, %cst_25 {dimension_numbers = #tpu.dot_dimension_numbers<[1], [0], [0], [1], [0, 0, 1, 1], [], []>} : vector<8x128xbf16>, vector<128x128xbf16>, vector<8x128xf32> -> vector<8x128xf32>
    %41 = vector.broadcast %30 : vector<1x128xf32> to vector<8x128xf32>
    %42 = arith.addf %40, %41 : vector<8x128xf32>
    %43 = arith.subf %42, %1 : vector<8x128xf32>
    %44 = arith.mulf %43, %43 : vector<8x128xf32>
    %c0_26 = arith.constant 0 : index
    %c0_27 = arith.constant 0 : index
    %45 = vector.load %arg7[%c0_26, %c0_27] : memref<8x128xf32, #tpu.memory_space<vmem>>, vector<8x128xf32>
    tpu.vector_store %arg7[%c0_26, %c0_27], %44 {strides = array<i32>} : memref<8x128xf32, #tpu.memory_space<vmem>>, vector<8x128xf32>,
    return
  }
  func.func @transform_0(%arg0: i32) -> (i32, i32, i32) {
    %c0_i32 = arith.constant 0 : i32
    %c0_i32_0 = arith.constant 0 : i32
    %c0_i32_1 = arith.constant 0 : i32
    return %c0_i32, %arg0, %c0_i32_0 : i32, i32, i32
  }
  func.func @transform_1(%arg0: i32) -> (i32, i32) {
    %c0_i32 = arith.constant 0 : i32
    %c0_i32_0 = arith.constant 0 : i32
    return %arg0, %c0_i32 : i32, i32
  }
  func.func @transform_2(%arg0: i32) -> (i32, i32) {
    %c0_i32 = arith.constant 0 : i32
    %c0_i32_0 = arith.constant 0 : i32
    return %arg0, %c0_i32 : i32, i32
  }
  func.func @transform_3(%arg0: i32) -> (i32, i32) {
    %c0_i32 = arith.constant 0 : i32
    %c0_i32_0 = arith.constant 0 : i32
    %c0_i32_1 = arith.constant 0 : i32
    return %c0_i32, %c0_i32_0 : i32, i32
  }
  func.func @transform_4(%arg0: i32) -> (i32, i32) {
    %c0_i32 = arith.constant 0 : i32
    %c0_i32_0 = arith.constant 0 : i32
    %c0_i32_1 = arith.constant 0 : i32
    return %c0_i32, %c0_i32_0 : i32, i32
  }
  func.func @transform_5(%arg0: i32) -> (i32, i32) {
    %c0_i32 = arith.constant 0 : i32
    %c0_i32_0 = arith.constant 0 : i32
    %c0_i32_1 = arith.constant 0 : i32
    return %c0_i32, %c0_i32_0 : i32, i32
  }
  func.func @transform_6(%arg0: i32) -> (i32, i32) {
    %c0_i32 = arith.constant 0 : i32
    %c0_i32_0 = arith.constant 0 : i32
    return %arg0, %c0_i32 : i32, i32
  }
}

</mosaic_0001>

<bundles_post_ra>
// kernel: tpu_custom_call.1
= control target key start
LH: loop header
LB: loop body
LE: loop exit
PB: predicated region body
PF: predicated region fallthrough
CT: control target
= control target key end

     0   :  { %11 = vsyncpa [#allocation3], 0  ;;  %s1189_s0 = inlined_call_operand.hbm [shape: f32[4,8,128], index: 0, kind: input, shape index: {}]   ;;  %s1190_s1 = inlined_call_operand.hbm [shape: f32[8,256], index: 1, kind: input, shape index: {}]   ;;  %s1191_s2 = inlined_call_operand.hbm [shape: f32[64,128], index: 2, kind: input, shape index: {}]   ;;  %s1192_s3 = inlined_call_operand.hbm [shape: bf16[512,128], index: 3, kind: input, shape index: {}]   ;;  %s1193_s4 = inlined_call_operand.hbm [shape: bf16[128,128], index: 4, kind: input, shape index: {}]   ;;  %s1194_s5 = inlined_call_operand.vmem [shape: f32[2,128], index: 5, kind: input, shape index: {}]   ;;  %s1195_s6 = inlined_call_operand.hbm [shape: f32[8,128], index: 6, kind: output, shape index: {}]  }
   0x1   :  { %12 = vsyncpa [#allocation6], 0 }
   0x2   :  { %13 = vsyncpa [#allocation9], 0 }
   0x3   :  { %14 = vsyncpa [#allocation4], 0  ;;  %s1021_s21 = smov [#allocation5]   ;;  %s1022_s23 = smov [#allocation8]  }
   0x4   :  { %s33_s22 = sshll.u32 %s1021_s21, 4  ;;  %s54_s24 = sshll.u32 %s1022_s23, 4  ;;  %s34_s22 = int_to_ptr.vmem [resolvable:$true] %s33_s22  ;;  %s1069_s24 = int_to_ptr.vmem [resolvable:$true] %s54_s24 }
   0x5   :  { %s881_s27 = scalar_lea.hbm %s1190_s1, 256 }
   0x6   :  { %p882_p0 = scmp.ne.s32.totalorder %s1190_s1, %s881_s27  ;;  %p885_p1 = scmp.lt.u32.totalorder %s881_s27, %s1190_s1 }
   0x8   :  { %p887_p2 = pnand %p885_p1, %p882_p0 }
   0xa   :  { %890 = shalt.err (!%p887_p2)
}
   0xb   :  { %s891_s8 = scalar_lea.vmem %s34_s22, 256  ;;  %p896_p4 = scmp.lt.s32.totalorder %s34_s22, %s34_s22 }
   0xc   :  { %p892_p3 = scmp.ne.s32.totalorder %s34_s22, %s891_s8  ;;  %p897_p5 = scmp.lt.s32.totalorder %s891_s8, %s891_s8 }
   0xe   :  { %p898_p6 = por %p897_p5, %p896_p4 }
  0x10   :  { %p899_p7 = pnand %p898_p6, %p892_p3 }
  0x12   :  { %902 = shalt.err (!%p899_p7)
}
  0x13   :  { %36 = dma.hbm_to_vmem [thread:$0]  %s1190_s1, 256, %s34_s22, [#allocation6]  }
  0x14   :  { %s903_s13 = scalar_lea.hbm %s1192_s3, 4096 }
  0x15   :  { %p904_p8 = scmp.ne.s32.totalorder %s1192_s3, %s903_s13  ;;  %p907_p9 = scmp.lt.u32.totalorder %s903_s13, %s1192_s3 }
  0x17   :  { %p909_p10 = pnand %p907_p9, %p904_p8 }
  0x19   :  { %912 = shalt.err (!%p909_p10)
}
  0x1a   :  { %s913_s18 = scalar_lea.vmem %s1069_s24, 4096  ;;  %p918_p12 = scmp.lt.s32.totalorder %s1069_s24, %s1069_s24 }
  0x1b   :  { %p914_p11 = scmp.ne.s32.totalorder %s1069_s24, %s913_s18  ;;  %p919_p13 = scmp.lt.s32.totalorder %s913_s18, %s913_s18 }
  0x1d   :  { %p920_p0 = por %p919_p13, %p918_p12 }
  0x1f   :  { %p921_p1 = pnand %p920_p0, %p914_p11 }
  0x21   :  { %924 = shalt.err (!%p921_p1)
}
  0x22   :  { %s1023_s1 = smov 64   ;;  %s1024_s19 = smov 4  }
  0x23   :  { %60 = dma.hbm_to_vmem [thread:$0]  %s1192_s3, 4096, %s1069_s24, [#allocation9], %s1023_s1, %s1023_s1, %s1024_s19  }
  0x24   :  { %s1025_s22 = smov [#allocation2]   ;;  %s925_s27 = scalar_lea.hbm %s1189_s0, 512 }
  0x25   :  { %s20_s23 = sshll.u32 %s1025_s22, 4  ;;  %p926_p2 = scmp.ne.s32.totalorder %s1189_s0, %s925_s27  ;;  %s21_s23 = int_to_ptr.vmem [resolvable:$true] %s20_s23 }
  0x26   :  { %p929_p3 = scmp.lt.u32.totalorder %s925_s27, %s1189_s0 }
  0x28   :  { %p931_p4 = pnand %p929_p3, %p926_p2 }
  0x2a   :  { %934 = shalt.err (!%p931_p4)
}
  0x2b   :  { %s935_s8 = scalar_lea.vmem %s21_s23, 512  ;;  %p940_p6 = scmp.lt.s32.totalorder %s21_s23, %s21_s23 }
  0x2c   :  { %p936_p5 = scmp.ne.s32.totalorder %s21_s23, %s935_s8  ;;  %p941_p7 = scmp.lt.s32.totalorder %s935_s8, %s935_s8 }
  0x2e   :  { %p942_p8 = por %p941_p7, %p940_p6 }
  0x30   :  { %p943_p9 = pnand %p942_p8, %p936_p5 }
  0x32   :  { %946 = shalt.err (!%p943_p9)
}
  0x33   :  { %s1026_s3 = smov 128   ;;  %s1027_s24 = smov 8  }
  0x34   :  { %26 = dma.hbm_to_vmem [thread:$0]  %s1189_s0, 512, %s21_s23, [#allocation3], %s1026_s3, %s1026_s3, %s1027_s24  }
  0x35   :  { %s1028_s11 = smov [#allocation7]   ;;  %s1029_s13 = smov [#allocation10]  }
  0x36   :  { %s42_s12 = sshll.u32 %s1028_s11, 4  ;;  %s66_s14 = sshll.u32 %s1029_s13, 4  ;;  %s43_s12 = int_to_ptr.vmem [resolvable:$true] %s42_s12  ;;  %s67_s14 = int_to_ptr.vmem [resolvable:$true] %s66_s14 }
  0x37   :  { %s947_s17 = scalar_lea.hbm %s1191_s2, 1024 }
  0x38   :  { %p948_p10 = scmp.ne.s32.totalorder %s1191_s2, %s947_s17  ;;  %p951_p11 = scmp.lt.u32.totalorder %s947_s17, %s1191_s2 }
  0x3a   :  { %p953_p12 = pnand %p951_p11, %p948_p10 }
  0x3c   :  { %956 = shalt.err (!%p953_p12)
}
  0x3d   :  { %s957_s0 = scalar_lea.vmem %s43_s12, 1024  ;;  %p962_p0 = scmp.lt.s32.totalorder %s43_s12, %s43_s12 }
  0x3e   :  { %p958_p13 = scmp.ne.s32.totalorder %s43_s12, %s957_s0  ;;  %p963_p1 = scmp.lt.s32.totalorder %s957_s0, %s957_s0 }
  0x40   :  { %p964_p2 = por %p963_p1, %p962_p0 }
  0x42   :  { %p965_p3 = pnand %p964_p2, %p958_p13 }
  0x44   :  { %968 = shalt.err (!%p965_p3)
}
  0x45   :  { %48 = dma.hbm_to_vmem [thread:$0]  %s1191_s2, 1024, %s43_s12, [#allocation6], %s1026_s3, %s1026_s3, %s1027_s24  }
  0x46   :  { %s969_s28 = scalar_lea.hbm %s1193_s4, 1024 }
  0x47   :  { %p970_p4 = scmp.ne.s32.totalorder %s1193_s4, %s969_s28  ;;  %p973_p5 = scmp.lt.u32.totalorder %s969_s28, %s1193_s4 }
  0x49   :  { %p975_p6 = pnand %p973_p5, %p970_p4 }
  0x4b   :  { %978 = shalt.err (!%p975_p6)
}
  0x4c   :  { %s979_s9 = scalar_lea.vmem %s67_s14, 1024  ;;  %p984_p8 = scmp.lt.s32.totalorder %s67_s14, %s67_s14 }
  0x4d   :  { %p980_p7 = scmp.ne.s32.totalorder %s67_s14, %s979_s9  ;;  %p985_p9 = scmp.lt.s32.totalorder %s979_s9, %s979_s9 }
  0x4f   :  { %p986_p10 = por %p985_p9, %p984_p8 }
  0x51   :  { %p987_p11 = pnand %p986_p10, %p980_p7 }
  0x53   :  { %990 = shalt.err (!%p987_p11)
}
  0x54   :  { %72 = dma.hbm_to_vmem [thread:$0]  %s1193_s4, 1024, %s67_s14, [#allocation9], %s1023_s1, %s1023_s1, %s1024_s19  }
  0x55   :  { %1013 = dma.done.wait [#allocation3], 512  }
  0x56   :  { %1014 = vsyncadd [#allocation3], 4294966784 }
  0x57   :  { %1015 = dma.done.wait [#allocation6], 1280  }
  0x58   :  { %1016 = vsyncadd [#allocation6], 4294966016 }
  0x59   :  { %1017 = dma.done.wait [#allocation9], 5120  }
  0x5a   :  { %1018 = vsyncadd [#allocation9], 4294962176  ;;  %v101_v0 = vlaneseq  ;;  %v1030_v1 = vmov 0.0|0.0   ;;  %vm1031_vm0 = vmmov 0   ;;  %v1032_v2 = vmov 0.0   ;;  %v112_v4 = vld [vmem:[#allocation7] sm:$0xff] }
  0x5b   :  { %816 = vmatprep.subr.bf16.mxu0 %v1030_v1  ;;  %793 = vmatprep.mubr.msk.f32.mxu0 %vm1031_vm0, %v1032_v2  ;;  %v113_v5 = vld [vmem:[#allocation7 + $0x8] sm:$0xff]  ;;  %v114_v6 = vld [vmem:[#allocation7 + $0x10] sm:$0xff]  ;;  %v115_v9 = vld [vmem:[#allocation7 + $0x18] sm:$0xff]  ;;  %vm120_vm4 = vcmask 523264   ;;  %s1033_s10 = smov [#allocation11]  }
  0x5c   :  { %v102_v3 = vshrl.u32 %v101_v0, 7  ;;  %v817_v8 = vpack.c.bf16 %v113_v5, %v112_v4  ;;  %v116_v10 = vld [vmem:[#allocation7 + $0x20] sm:$0xff]  ;;  %v117_v11 = vld [vmem:[#allocation7 + $0x28] sm:$0xff]  ;;  %v104_v12 = vand.u32 127, %v101_v0  ;;  %v820_v13 = vpack.c.bf16 %v115_v9, %v114_v6  ;;  %v118_v21 = vld [vmem:[#allocation7 + $0x30] sm:$0xff]  ;;  %s661_s11 = sshll.u32 %s1033_s10, 4  ;;  %s662_s11 = int_to_ptr.vmem [resolvable:$true] %s661_s11 }
  0x5d   :  { %v841_v15 = vld [vmem:[#allocation8 + $0x40] sm:$0xff]   ;;  %v843_v18 = vld [vmem:[#allocation8 + $0x48] sm:$0xff]   ;;  %v823_v20 = vpack.c.bf16 %v117_v11, %v116_v10  ;;  %v119_v22 = vld [vmem:[#allocation7 + $0x38] sm:$0xff]  ;;  %s991_s12 = scalar_lea.vmem %s662_s11, 128  ;;  %p996_p13 = scmp.lt.s32.totalorder %s662_s11, %s662_s11 }
  0x5e   :  { %v107_v7 = vadd.s32 1, %v102_v3  ;;  %818 = vmatpush3.bf16.msra.mxu0 %v817_v8  ;;  %v105_v14 = vmul.u32 8, %v102_v3  ;;  %v842_v17 = vld [vmem:[#allocation8] sm:$0xff]   ;;  %724 = vmatprep.subr.bf16.mxu1 %v841_v15  ;;  %v844_v19 = vld [vmem:[#allocation8 + $0x8] sm:$0xff]   ;;  %v847_v25 = vld [vmem:[#allocation8 + $0x50] sm:$0xff]   ;;  %v826_v27 = vpack.c.bf16 %v119_v22, %v118_v21  ;;  %p992_p12 = scmp.ne.s32.totalorder %s662_s11, %s991_s12  ;;  %p997_p0 = scmp.lt.s32.totalorder %s991_s12, %s991_s12 }
  0x5f   :  { %819 = vmatprep.subr.bf16.mxu0 %v1030_v1  ;;  %725 = vmatpush3.bf16.msra.mxu1 %v842_v17  ;;  %v848_v26 = vld [vmem:[#allocation8 + $0x10] sm:$0xff]   ;;  %v845_v28 = vld [vmem:[#allocation8 + $0xc0] sm:$0xff]   ;;  %v851_v29 = vld [vmem:[#allocation8 + $0x58] sm:$0xff]  }
  0x60   :  { %v108_v16 = vmul.u32 8, %v107_v7  ;;  %726 = vmatprep.subr.bf16.mxu1 %v843_v18  ;;  %vm1144_vm1 = vcmp.ge.s32.totalorder %v104_v12, %v105_v14  ;;  %v852_v30 = vld [vmem:[#allocation8 + $0x18] sm:$0xff]   ;;  %v846_v32 = vld [vmem:[#allocation8 + $0x80] sm:$0xff]   ;;  %v849_v33 = vld [vmem:[#allocation8 + $0xc8] sm:$0xff]   ;;  %p998_p1 = por %p997_p0, %p996_p13 }
  0x61   :  { %v855_v34 = vld [vmem:[#allocation8 + $0x60] sm:$0xff]   ;;  %v850_v36 = vld [vmem:[#allocation8 + $0x88] sm:$0xff]   ;;  %v853_v37 = vld [vmem:[#allocation8 + $0xd0] sm:$0xff]  }
  0x62   :  { %821 = vmatpush3.bf16.msra.mxu0 %v820_v13  ;;  %vm1148_vm2 = vcmp.lt.s32.totalorder %v104_v12, %v108_v16  ;;  %v856_v35 = vld [vmem:[#allocation8 + $0x20] sm:$0xff]   ;;  %v859_v38 = vld [vmem:[#allocation8 + $0x68] sm:$0xff]   ;;  %v854_v40 = vld [vmem:[#allocation8 + $0x90] sm:$0xff]   ;;  %p999_p2 = pnand %p998_p1, %p992_p12 }
  0x63   :  { %822 = vmatprep.subr.bf16.mxu0 %v1030_v1  ;;  %727 = vmatpush3.bf16.msra.mxu1 %v844_v19  ;;  %vm110_vm3 = vmand %vm1144_vm1, %vm1148_vm2  ;;  %v860_v39 = vld [vmem:[#allocation8 + $0x28] sm:$0xff]   ;;  %v857_v41 = vld [vmem:[#allocation8 + $0xd8] sm:$0xff]  }
  0x64   :  { %728 = vmatprep.subr.bf16.mxu1 %v847_v25  ;;  %v111_v31 = vsel %vm110_vm3, 0.125, %v1032_v2  ;;  %v863_v42 = vld [vmem:[#allocation8 + $0x70] sm:$0xff]   ;;  %v858_v44 = vld [vmem:[#allocation8 + $0x98] sm:$0xff]   ;;  %v861_v45 = vld [vmem:[#allocation8 + $0xe0] sm:$0xff]  }
  0x65   :  { %v864_v43 = vld [vmem:[#allocation8 + $0x30] sm:$0xff]   ;;  %v867_v46 = vld [vmem:[#allocation8 + $0x78] sm:$0xff]   ;;  %v862_v48 = vld [vmem:[#allocation8 + $0xa0] sm:$0xff]  }
  0x66   :  { %824 = vmatpush3.bf16.msra.mxu0 %v823_v20  ;;  %v868_v47 = vld [vmem:[#allocation8 + $0x38] sm:$0xff]   ;;  %v865_v49 = vld [vmem:[#allocation8 + $0xe8] sm:$0xff]   ;;  %v194_v51 = vld [vmem:[#allocation5] sm:$0xff] }
  0x67   :  { %825 = vmatprep.subr.bf16.mxu0 %v1030_v1  ;;  %729 = vmatpush3.bf16.msra.mxu1 %v848_v26  ;;  %v866_v50 = vld [vmem:[#allocation8 + $0xa8] sm:$0xff]   ;;  %v1157_v52 = vld [vmem:[#allocation2] sm:$0xff]  ;;  %v93_v53 = vld [vmem:[#allocation2 + $0x8] sm:$0xff]  ;;  %v199_v55 = vpack.c.bf16 %v194_v51, %v194_v51 }
  0x68   :  { %730 = vmatprep.subr.bf16.mxu1 %v851_v29  ;;  %v869_v54 = vld [vmem:[#allocation8 + $0xf0] sm:$0xff]   ;;  %v95_v56 = vld [vmem:[#allocation2 + $0x10] sm:$0xff]  ;;  %v97_v57 = vld [vmem:[#allocation2 + $0x18] sm:$0xff] }
  0x69   :  { %v98_v58 = vmul.f32 %v95_v56, %v1157_v52  ;;  %v99_v59 = vmul.f32 %v97_v57, %v93_v53  ;;  %494 = vmatprep.mubr.bf16.mxu1 %v199_v55  ;;  %v870_v60 = vld [vmem:[#allocation8 + $0xb0] sm:$0xff]   ;;  %v871_v63 = vld [vmem:[#allocation8 + $0xf8] sm:$0xff]   ;;  %v873_v1 = vld [vmem:[#allocation10] sm:$0xff]  }
  0x6a   :  { %827 = vmatpush3.bf16.msra.mxu0 %v826_v27  ;;  %v872_v0 = vld [vmem:[#allocation8 + $0xb8] sm:$0xff]   ;;  %v874_v3 = vld [vmem:[#allocation10 + $0x8] sm:$0xff]   ;;  %v875_v4 = vld [vmem:[#allocation10 + $0x10] sm:$0xff]  }
  0x6b   :  { %746 = vmatprep.subr.bf16.mxu0 %v845_v28  ;;  %731 = vmatpush3.bf16.msra.mxu1 %v852_v30  ;;  %v100_v61 = vadd.f32 %v99_v59, %v98_v58  ;;  %v876_v5 = vld [vmem:[#allocation10 + $0x18] sm:$0xff]   ;;  %v877_v6 = vld [vmem:[#allocation10 + $0x20] sm:$0xff]   ;;  %v878_v7 = vld [vmem:[#allocation10 + $0x28] sm:$0xff]  }
  0x6c   :  { %732 = vmatprep.subr.bf16.mxu1 %v855_v34  ;;  %v195_v8 = vld [vmem:[#allocation5 + $0x8] sm:$0xff]  ;;  %v879_v18 = vld [vmem:[#allocation10 + $0x30] sm:$0xff]  }
  0x6d   :  { %794 = vmatmul.mubr.msk.f32.vlgmr.msra.gmra.mrb[0].mxu0 %vm120_vm4, %v111_v31  ;;  %v198_v62 = vpack.c.bf16 %v100_v61, %v100_v61  ;;  %v200_v10 = vpack.c.bf16 %v195_v8, %v195_v8  ;;  %v880_v19 = vld [vmem:[#allocation10 + $0x38] sm:$0xff]   ;;  %v673_v20 = vld [vmem:[%s1194_s5] ss:$0 sm:$0xff] }
  0x6e   :  { %747 = vmatpush3.bf16.msra.mxu0 %v846_v32 }
  0x6f   :  { %748 = vmatprep.subr.bf16.mxu0 %v849_v33  ;;  %733 = vmatpush3.bf16.msra.mxu1 %v856_v35 }
  0x70   :  { %734 = vmatprep.subr.bf16.mxu1 %v859_v38 }
  0x72   :  { %749 = vmatpush3.bf16.msra.mxu0 %v850_v36 }
  0x73   :  { %750 = vmatprep.subr.bf16.mxu0 %v853_v37  ;;  %735 = vmatpush3.bf16.msra.mxu1 %v860_v39 }
  0x74   :  { %736 = vmatprep.subr.bf16.mxu1 %v863_v42 }
  0x76   :  { %751 = vmatpush3.bf16.msra.mxu0 %v854_v40 }
  0x77   :  { %752 = vmatprep.subr.bf16.mxu0 %v857_v41  ;;  %737 = vmatpush3.bf16.msra.mxu1 %v864_v43 }
  0x78   :  { %738 = vmatprep.subr.bf16.mxu1 %v867_v46 }
  0x7a   :  { %753 = vmatpush3.bf16.msra.mxu0 %v858_v44 }
  0x7b   :  { %754 = vmatprep.subr.bf16.mxu0 %v861_v45  ;;  %739 = vmatpush3.bf16.msra.mxu1 %v868_v47 }
  0x7c   :  { %796 = vmatprep.subr.bf16.mxu1 %v1032_v2 }
  0x7e   :  { %755 = vmatpush3.bf16.msra.mxu0 %v862_v48  ;;  %495 = vmatmul.mubr.bf16.vlgmr.msra.gmra.mrb[0].mxu1 %v198_v62 }
  0x7f   :  { %756 = vmatprep.subr.bf16.mxu0 %v865_v49  ;;  %812 = vmatprep.mubr.msk.bf16.mxu1 %vm1031_vm0, %v1032_v2 }
  0x80   :  { %797 = vmatpush3.bf16.msra.mxu1 %v873_v1 }
  0x81   :  { %798 = vmatprep.subr.bf16.mxu1 %v1032_v2 }
  0x82   :  { %757 = vmatpush3.bf16.msra.mxu0 %v866_v50 }
  0x83   :  { %758 = vmatprep.subr.bf16.mxu0 %v869_v54 }
  0x84   :  { %799 = vmatpush3.bf16.msra.mxu1 %v874_v3 }
  0x85   :  { %800 = vmatprep.subr.bf16.mxu1 %v1032_v2 }
  0x86   :  { %759 = vmatpush3.bf16.msra.mxu0 %v870_v60 }
  0x87   :  { %760 = vmatprep.subr.bf16.mxu0 %v871_v63 }
  0x88   :  { %801 = vmatpush3.bf16.msra.mxu1 %v875_v4 }
  0x89   :  { %802 = vmatprep.subr.bf16.mxu1 %v1032_v2 }
  0x8a   :  { %761 = vmatpush3.bf16.msra.mxu0 %v872_v0 }
  0x8c   :  { %803 = vmatpush3.bf16.msra.mxu1 %v876_v5 }
  0x8d   :  { %804 = vmatprep.subr.bf16.mxu1 %v1032_v2 }
  0x90   :  { %805 = vmatpush3.bf16.msra.mxu1 %v877_v6 }
  0x91   :  { %806 = vmatprep.subr.bf16.mxu1 %v1032_v2 }
  0x94   :  { %807 = vmatpush3.bf16.msra.mxu1 %v878_v7 }
  0x95   :  { %808 = vmatprep.subr.bf16.mxu1 %v1032_v2 }
  0x98   :  { %809 = vmatpush3.bf16.msra.mxu1 %v879_v18 }
  0x99   :  { %810 = vmatprep.subr.bf16.mxu1 %v1032_v2  ;;  %v706_v2 = vld [vmem:[%s1194_s5 + $0x1] ss:$0 sm:$0xff] }
  0x9c   :  { %811 = vmatpush3.bf16.msra.mxu1 %v880_v19 }
 0x140   :  { %v190_v9 = vpop.f32.mrb[0].mxu0 }
 0x141   :  { %v201_v11 = vpack.c.bf16 %v190_v9, %v190_v9  ;;  %v795_v12 = vpop.f32.mrb[1].mxu0 }
 0x143   :  { %534 = vmatprep.mubr.bf16.mxu0 %v201_v11 }
 0x144   :  { %535 = vmatmul.mubr.bf16.vlgmr.msra.gmra.mrb[4].mxu0 %v200_v10 }
 0x151   :  { %v740_v13 = vpop.f32.mrb[0].mxu1 }
 0x152   :  { %v741_v14 = vpop.f32.mrb[1].mxu1 }
 0x153   :  { %v742_v15 = vadd.f32 %v741_v14, %v740_v13  ;;  %v743_v16 = vpop.f32.mrb[2].mxu1 }
 0x154   :  { %v744_v17 = vpop.f32.mrb[3].mxu1 }
 0x155   :  { %v497_v21 = vadd.f32 %v742_v15, %v673_v20 }
 0x217   :  { %v762_v22 = vpop.f32.mrb[4].mxu0 }
 0x218   :  { %v763_v23 = vpop.f32.mrb[5].mxu0 }
 0x219   :  { %v764_v24 = vadd.f32 %v763_v23, %v762_v22  ;;  %v765_v25 = vpop.f32.mrb[6].mxu0 }
 0x21a   :  { %v766_v26 = vpop.f32.mrb[7].mxu0 }
 0x21b   :  { %v537_v27 = vadd.f32 %v764_v24, %v497_v21 }
 0x21d   :  { %v542_v28 = vmax.f32 %v537_v27, 0.0 }
 0x21f   :  { %v543_v29 = vpack.c.bf16 %v542_v28, %v542_v28 }
 0x221   :  { %813 = vmatmul.mubr.bf16.vlgmr.msra.gmra.mrb[4].mxu1 %v543_v29 }
 0x2f4   :  { %v646_v30 = vpop.f32.mrb[4].mxu1 }
 0x2f5   :  { %v647_v31 = vadd.f32 %v706_v2, %v646_v30  ;;  %v814_v32 = vpop.f32.mrb[5].mxu1 }
 0x2f6   :  { %v649_v33 = vpop.f32.mrb[6].mxu1 }
 0x2f7   :  { %v652_v34 = vsub.f32 %v647_v31, %v1157_v52  ;;  %v815_v35 = vpop.f32.mrb[7].mxu1 }
 0x2f9   :  { %v653_v36 = vmul.f32 %v652_v34, %v652_v34 }
 0x2fb   :  { %654 = vst [vmem:[#allocation11] sm:$0xff] %v653_v36 }
 0x2fc   :  { %1002 = shalt.err (!%p999_p2)
}
 0x2fd   :  { %s1003_s14 = scalar_lea.hbm %s1195_s6, 128 }
 0x2fe   :  { %p1004_p3 = scmp.ne.s32.totalorder %s1195_s6, %s1003_s14  ;;  %p1007_p4 = scmp.lt.u32.totalorder %s1003_s14, %s1195_s6 }
 0x300   :  { %p1009_p5 = pnand %p1007_p4, %p1004_p3 }
 0x302   :  { %1012 = shalt.err (!%p1009_p5)
}
 0x303   :  { %664 = dma.vmem_to_hbm [thread:$0]  %s662_s11, 128, %s1195_s6, [#allocation4]  }
 0x304   :  { %1019 = dma.done.wait [#allocation4], 128  }
 0x305   :  { %1020 = vsyncadd [#allocation4], 4294967168 }
 0x306   :  { %668 = vsyncpa [#allocation3], 1 }
 0x307   :  { %669 = vsyncpa [#allocation6], 1 }
 0x308   :  { %670 = vsyncpa [#allocation9], 1 }
 0x309   :  { %671 = vsyncpa [#allocation4], 1 }

</bundles_post_ra>
